<compile_context>
chip_gen: v7x
topology: tpu7x:2x2x1
jax: 0.10.0
libtpu: 0.0.40
codegen_flags: <defaults>
</compile_context>

<pallas_src>
import functools

import jax
import jax.numpy as jnp
from jax.experimental import pallas as pl
from jax.experimental.pallas import tpu as pltpu

_LANES = 128


def _accumulate(yp_ref, yt_ref, inter_ref, sums_ref, row_mask=None):
    yp = yp_ref[...].astype(jnp.float32)
    yt = yt_ref[...].astype(jnp.float32)
    if row_mask is not None:
        yp = jnp.where(row_mask, yp, 0.0)
        yt = jnp.where(row_mask, yt, 0.0)
    # Per-lane partials only (pure VPU work that hides under the DMA); the
    # cross-lane reduction happens once, in the tiny JAX epilogue.
    inter_ref[...] += jnp.sum(yp * yt, axis=1)[None]
    sums_ref[...] += jnp.sum(yp + yt, axis=1)[None]
    # TODO(synk): if a v7x bf16 profile ever shows VALU as the binding slot,
    # these sublane sums can be moved to the idle MXU via a ones-vector
    # contraction; DMA dominates on v5e/v6e so it is left on the VPU here.


def _jaccard_partial_kernel(yp_ref, yt_ref, inter_ref, sums_ref, *,
                            kchunks, tile_rows, rows, needs_mask):
    """Grid: (ncores, kchunks).

    Axis 0 splits the reduction across TensorCores (size 1 on 1-TC chips),
    axis 1 is the 'arbitrary' reduction over row-chunks of the (B, R, 128)
    view.

    yp_ref / yt_ref : (B, tile_rows, 128) VMEM tiles (source dtype)
    inter_ref       : (1, B, 128) f32 per-core / per-lane partial sum(yp*yt)
    sums_ref        : (1, B, 128) f32 per-core / per-lane partial sum(yp+yt)
    """
    k = pl.program_id(1)

    @pl.when(k == 0)
    def _():
        inter_ref[...] = jnp.zeros_like(inter_ref)
        sums_ref[...] = jnp.zeros_like(sums_ref)

    if not needs_mask:
        _accumulate(yp_ref, yt_ref, inter_ref, sums_ref)
        return

    c = pl.program_id(0)
    start = (c * kchunks + k) * tile_rows

    # Full interior tiles: hot path, no masking work.
    @pl.when(start + tile_rows <= rows)
    def _():
        _accumulate(yp_ref, yt_ref, inter_ref, sums_ref)

    # The single boundary tile: mask the overhanging rows.
    @pl.when(jnp.logical_and(start < rows, start + tile_rows > rows))
    def _():
        row_ids = jax.lax.broadcasted_iota(jnp.int32, (1, tile_rows, 1), 1)
        valid = (start + row_ids) < rows
        _accumulate(yp_ref, yt_ref, inter_ref, sums_ref, row_mask=valid)

    # Clamped duplicate tiles (start >= rows, uneven per-core split) skip
    # compute entirely; their DMA re-reads an in-bounds block and is ignored.


def _device_kind():
    try:
        return jax.devices()[0].device_kind.lower()
    except Exception:  # pragma: no cover - device query failure
        return ""


def _num_tensorcores(kind):
    # v7x exposes two TensorCores per chip to Pallas; v5e/v6e have one.
    return 2 if ("v7" in kind or "7x" in kind) else 1


def _vmem_budget_bytes():
    # ~25% headroom under the queried VMEM capacity; conservative fallback
    # that is safe on every generation (v7x physical VMEM = 64 MiB).
    try:
        cap = int(pltpu.get_tpu_info().vmem_capacity_bytes)
        return max(16 << 20, (cap * 3) // 4)
    except Exception:
        return 48 << 20


@functools.partial(jax.jit, static_argnames=("block_bytes", "force_ncores"))
def jaccard_loss(y_pred, y_true, *, block_bytes=None, force_ncores=None):
    """Pallas implementation of JaccardLoss.forward (NCHW inputs)."""
    assert y_pred.shape == y_true.shape
    b = y_pred.shape[0]
    n = 1
    for d in y_pred.shape[1:]:
        n *= d

    yp = y_pred.reshape(b, n)
    yt = y_true.reshape(b, n)

    # Lane-align the reduction axis.  For typical segmentation shapes
    # (C*H*W % 128 == 0) this is a free reshape; only unusual shapes pay a
    # small pad-copy here (zeros do not change any of the sums).
    if n % _LANES != 0:
        pad = _LANES - n % _LANES
        yp = jnp.pad(yp, ((0, 0), (0, pad)))
        yt = jnp.pad(yt, ((0, 0), (0, pad)))
        n += pad
    rows = n // _LANES
    yp = yp.reshape(b, rows, _LANES)
    yt = yt.reshape(b, rows, _LANES)

    # --- generation-aware budgets (trace-time Python) --------------------
    kind = _device_kind()
    ncores_avail = _num_tensorcores(kind)
    vmem_budget = _vmem_budget_bytes()
    if block_bytes is None:
        # Combined (both inputs) payload per grid step.  Double-buffered VMEM
        # use is ~2x this plus tiny accumulators, so cap at a third of the
        # scoped budget (=> ~16 MiB steps on every current generation).
        block_bytes = min(16 << 20, vmem_budget // 3)

    # Dtype-native sublane pack: 8 rows for f32, 16 for bf16, 32 for int8/fp8.
    pack = max(32 // yp.dtype.itemsize, 32 // yt.dtype.itemsize, 8)

    bytes_per_row = b * _LANES * (yp.dtype.itemsize + yt.dtype.itemsize)
    tr_cap = max(block_bytes // bytes_per_row, pack)
    tr_cap = (tr_cap // pack) * pack
    if rows <= tr_cap:
        tile_rows = rows          # single chunk; full-dim block is always legal
    else:
        tile_rows = tr_cap        # multiple of the sublane pack

    total_chunks = pl.cdiv(rows, tile_rows)
    ncores = min(force_ncores if force_ncores is not None else ncores_avail,
                 total_chunks)
    ncores = max(ncores, 1)
    kchunks = pl.cdiv(total_chunks, ncores)
    needs_mask = (ncores * kchunks * tile_rows) != rows
    max_blk = total_chunks - 1

    def in_index_map(c, k):
        blk = c * kchunks + k
        if needs_mask:
            # Keep logically-empty trailing blocks in bounds; the kernel
            # skips their compute via pl.when on the unclamped index.
            blk = jnp.minimum(blk, max_blk)
        return (0, blk, 0)

    if ncores > 1:
        if ncores <= ncores_avail and hasattr(pltpu, "CORE_PARALLEL"):
            dim_sem = (pltpu.CORE_PARALLEL, pltpu.ARBITRARY)
        else:
            dim_sem = ("parallel", "arbitrary")
    else:
        dim_sem = ("arbitrary", "arbitrary")

    kernel = functools.partial(
        _jaccard_partial_kernel,
        kchunks=kchunks,
        tile_rows=tile_rows,
        rows=rows,
        needs_mask=needs_mask,
    )

    inter_p, sums_p = pl.pallas_call(
        kernel,
        out_shape=(
            jax.ShapeDtypeStruct((ncores, b, _LANES), jnp.float32),
            jax.ShapeDtypeStruct((ncores, b, _LANES), jnp.float32),
        ),
        grid_spec=pltpu.PrefetchScalarGridSpec(
            num_scalar_prefetch=0,
            grid=(ncores, kchunks),
            in_specs=[
                pl.BlockSpec((b, tile_rows, _LANES), in_index_map),
                pl.BlockSpec((b, tile_rows, _LANES), in_index_map),
            ],
            out_specs=[
                pl.BlockSpec((1, b, _LANES), lambda c, k: (c, 0, 0)),
                pl.BlockSpec((1, b, _LANES), lambda c, k: (c, 0, 0)),
            ],
        ),
        compiler_params=pltpu.CompilerParams(
            dimension_semantics=dim_sem,
            vmem_limit_bytes=vmem_budget,
        ),
    )(yp, yt)

    # Tiny epilogue on (ncores, B, 128) partials: cross-core/cross-lane sums,
    # Jaccard ratio, batch mean.
    eps = 1e-15
    intersection = jnp.sum(inter_p, axis=(0, 2))
    union = jnp.sum(sums_p, axis=(0, 2)) - intersection
    jac = (intersection + eps) / (union + eps)
    return jnp.mean(1.0 - jac)


def jaccard_loss_ref(y_pred, y_true):
    eps = 1e-15
    axes = tuple(range(1, y_pred.ndim))
    intersection = jnp.sum(y_pred * y_true, axis=axes)
    union = jnp.sum(y_pred, axis=axes) + jnp.sum(y_true, axis=axes) - intersection
    jac = (intersection + eps) / (union + eps)
    return jnp.mean(1.0 - jac)


if __name__ == "__main__":
    key = jax.random.PRNGKey(0)

    def check(shape, **kw):
        k1, k2 = jax.random.split(jax.random.fold_in(key, sum(shape)))
        y_pred = jax.nn.sigmoid(jax.random.normal(k1, shape, jnp.float32))
        y_true = (jax.random.uniform(k2, shape) > 0.5).astype(jnp.float32)
        loss = jax.block_until_ready(jaccard_loss(y_pred, y_true, **kw))
        ref = jax.block_until_ready(jaccard_loss_ref(y_pred, y_true))
        assert jnp.allclose(loss, ref, atol=1e-5, rtol=1e-5), (shape, loss, ref)

    # Main small NCHW segmentation case: single-grid-step fast path, no pad.
    check((2, 4, 16, 16))
    # Multi-chunk path: tiny block size forces several grid steps and a
    # masked boundary tile.
    check((2, 4, 32, 36), block_bytes=4096)
    # Forced 2-way core split: exercises clamped duplicate blocks + skip path
    # (runs as a serial loop on 1-TC chips, real split on v7x).
    check((2, 4, 32, 36), block_bytes=4096, force_ncores=2)
    # Non-128-divisible C*H*W -> lane-pad fallback path.
    check((2, 3, 10, 10))

    print("KERNEL_OK")
</pallas_src>

<mosaic_0001>
module attributes {stable_mosaic.version = 11 : i64} {
  func.func @_jaccard_partial_kernel(%arg0: i32, %arg1: i32, %arg2: memref<2x8x128xf32, #tpu.memory_space<vmem>>, %arg3: memref<2x8x128xf32, #tpu.memory_space<vmem>>, %arg4: memref<1x2x128xf32, #tpu.memory_space<vmem>>, %arg5: memref<1x2x128xf32, #tpu.memory_space<vmem>>) attributes {dimension_semantics = [#tpu.dimension_semantics<arbitrary>, #tpu.dimension_semantics<arbitrary>], iteration_bounds = array<i64: 1, 1>, scalar_prefetch = 0 : i64, scratch_operands = 0 : i64, tpu.core_type = #tpu.core_type<tc>, window_params = [{transform_indices = @transform_0, window_bounds = array<i64: 2, 8, 128>}, {transform_indices = @transform_1, window_bounds = array<i64: 2, 8, 128>}, {transform_indices = @transform_2, window_bounds = array<i64: 1, 2, 128>}, {transform_indices = @transform_3, window_bounds = array<i64: 1, 2, 128>}]} {
    %c0_i32 = arith.constant 0 : i32
    %0 = arith.cmpi eq, %arg1, %c0_i32 : i32
    %1 = arith.extui %0 : i1 to i32
    %c0_i32_0 = arith.constant 0 : i32
    %2 = arith.cmpi ne, %1, %c0_i32_0 : i32
    scf.if %2 {
      %cst_19 = arith.constant 0.000000e+00 : f32
      %17 = vector.broadcast %cst_19 : f32 to vector<1x2x128xf32>
      %c0_20 = arith.constant 0 : index
      %c0_21 = arith.constant 0 : index
      %c0_22 = arith.constant 0 : index
      %18 = vector.load %arg4[%c0_20, %c0_21, %c0_22] : memref<1x2x128xf32, #tpu.memory_space<vmem>>, vector<1x2x128xf32>
      tpu.vector_store %arg4[%c0_20, %c0_21, %c0_22], %17 {strides = array<i32>} : memref<1x2x128xf32, #tpu.memory_space<vmem>>, vector<1x2x128xf32>,
      %cst_23 = arith.constant 0.000000e+00 : f32
      %19 = vector.broadcast %cst_23 : f32 to vector<1x2x128xf32>
      %c0_24 = arith.constant 0 : index
      %c0_25 = arith.constant 0 : index
      %c0_26 = arith.constant 0 : index
      %20 = vector.load %arg5[%c0_24, %c0_25, %c0_26] : memref<1x2x128xf32, #tpu.memory_space<vmem>>, vector<1x2x128xf32>
      tpu.vector_store %arg5[%c0_24, %c0_25, %c0_26], %19 {strides = array<i32>} : memref<1x2x128xf32, #tpu.memory_space<vmem>>, vector<1x2x128xf32>,
    } else {
    }
    %c0 = arith.constant 0 : index
    %c0_1 = arith.constant 0 : index
    %c0_2 = arith.constant 0 : index
    %3 = vector.load %arg2[%c0, %c0_1, %c0_2] : memref<2x8x128xf32, #tpu.memory_space<vmem>>, vector<2x8x128xf32>
    %c0_3 = arith.constant 0 : index
    %c0_4 = arith.constant 0 : index
    %c0_5 = arith.constant 0 : index
    %4 = vector.load %arg3[%c0_3, %c0_4, %c0_5] : memref<2x8x128xf32, #tpu.memory_space<vmem>>, vector<2x8x128xf32>
    %c0_6 = arith.constant 0 : index
    %c0_7 = arith.constant 0 : index
    %c0_8 = arith.constant 0 : index
    %5 = vector.load %arg4[%c0_6, %c0_7, %c0_8] : memref<1x2x128xf32, #tpu.memory_space<vmem>>, vector<1x2x128xf32>
    %6 = arith.mulf %3, %4 : vector<2x8x128xf32>
    %cst = arith.constant dense<0.000000e+00> : vector<2x128xf32>
    %7 = vector.multi_reduction <add>, %6, %cst [1] : vector<2x8x128xf32> to vector<2x128xf32>
    %8 = vector.shape_cast %7 : vector<2x128xf32> to vector<1x2x128xf32>
    %9 = arith.addf %5, %8 : vector<1x2x128xf32>
    %c0_9 = arith.constant 0 : index
    %c0_10 = arith.constant 0 : index
    %c0_11 = arith.constant 0 : index
    %10 = vector.load %arg4[%c0_9, %c0_10, %c0_11] : memref<1x2x128xf32, #tpu.memory_space<vmem>>, vector<1x2x128xf32>
    tpu.vector_store %arg4[%c0_9, %c0_10, %c0_11], %9 {strides = array<i32>} : memref<1x2x128xf32, #tpu.memory_space<vmem>>, vector<1x2x128xf32>,
    %c0_12 = arith.constant 0 : index
    %c0_13 = arith.constant 0 : index
    %c0_14 = arith.constant 0 : index
    %11 = vector.load %arg5[%c0_12, %c0_13, %c0_14] : memref<1x2x128xf32, #tpu.memory_space<vmem>>, vector<1x2x128xf32>
    %12 = arith.addf %3, %4 : vector<2x8x128xf32>
    %cst_15 = arith.constant dense<0.000000e+00> : vector<2x128xf32>
    %13 = vector.multi_reduction <add>, %12, %cst_15 [1] : vector<2x8x128xf32> to vector<2x128xf32>
    %14 = vector.shape_cast %13 : vector<2x128xf32> to vector<1x2x128xf32>
    %15 = arith.addf %11, %14 : vector<1x2x128xf32>
    %c0_16 = arith.constant 0 : index
    %c0_17 = arith.constant 0 : index
    %c0_18 = arith.constant 0 : index
    %16 = vector.load %arg5[%c0_16, %c0_17, %c0_18] : memref<1x2x128xf32, #tpu.memory_space<vmem>>, vector<1x2x128xf32>
    tpu.vector_store %arg5[%c0_16, %c0_17, %c0_18], %15 {strides = array<i32>} : memref<1x2x128xf32, #tpu.memory_space<vmem>>, vector<1x2x128xf32>,
    return
  }
  func.func @transform_0(%arg0: i32, %arg1: i32) -> (i32, i32, i32) {
    %c1_i32 = arith.constant 1 : i32
    %0 = arith.muli %arg0, %c1_i32 : i32
    %1 = arith.addi %0, %arg1 : i32
    %c0_i32 = arith.constant 0 : i32
    %c0_i32_0 = arith.constant 0 : i32
    %c0_i32_1 = arith.constant 0 : i32
    return %c0_i32, %1, %c0_i32_0 : i32, i32, i32
  }
  func.func @transform_1(%arg0: i32, %arg1: i32) -> (i32, i32, i32) {
    %c1_i32 = arith.constant 1 : i32
    %0 = arith.muli %arg0, %c1_i32 : i32
    %1 = arith.addi %0, %arg1 : i32
    %c0_i32 = arith.constant 0 : i32
    %c0_i32_0 = arith.constant 0 : i32
    %c0_i32_1 = arith.constant 0 : i32
    return %c0_i32, %1, %c0_i32_0 : i32, i32, i32
  }
  func.func @transform_2(%arg0: i32, %arg1: i32) -> (i32, i32, i32) {
    %c0_i32 = arith.constant 0 : i32
    %c0_i32_0 = arith.constant 0 : i32
    %c0_i32_1 = arith.constant 0 : i32
    return %arg0, %c0_i32, %c0_i32_0 : i32, i32, i32
  }
  func.func @transform_3(%arg0: i32, %arg1: i32) -> (i32, i32, i32) {
    %c0_i32 = arith.constant 0 : i32
    %c0_i32_0 = arith.constant 0 : i32
    %c0_i32_1 = arith.constant 0 : i32
    return %arg0, %c0_i32, %c0_i32_0 : i32, i32, i32
  }
}

</mosaic_0001>

<bundles_post_ra>
// kernel: jaccard_loss.1
= control target key start
LH: loop header
LB: loop body
LE: loop exit
PB: predicated region body
PF: predicated region fallthrough
CT: control target
= control target key end

     0   :  { %v121_v0 = vmov 0.0   ;;  %vm74_vm0 = vcmask 1041409   ;;  %s172_s2 = inlined_call_operand.vmem [shape: f32[1,2,128], index: 2, kind: output, shape index: {0}]   ;;  %s173_s3 = inlined_call_operand.vmem [shape: f32[1,2,128], index: 3, kind: output, shape index: {1}]   ;;  %s174_s0 = inlined_call_operand.vmem [shape: f32[2,8,128], index: 0, kind: input, shape index: {}]   ;;  %s175_s1 = inlined_call_operand.vmem [shape: f32[2,8,128], index: 1, kind: input, shape index: {}]  }
   0x1   :  { %51 = vst [vmem:[%s172_s2] sm:$0x3] %v121_v0  ;;  %52 = vst [vmem:[%s173_s3] sm:$0x3] %v121_v0  ;;  %v53_v1 = vld [vmem:[%s174_s0] sm:$0xff]  ;;  %v54_v2 = vld [vmem:[%s174_s0 + $0x8] sm:$0xff] }
   0x2   :  { %v55_v3 = vld [vmem:[%s175_s1] sm:$0xff]  ;;  %v56_v4 = vld [vmem:[%s175_s1 + $0x8] sm:$0xff] }
   0x3   :  { %v58_v5 = vmul.f32 %v55_v3, %v53_v1  ;;  %v80_v6 = vadd.f32 %v55_v3, %v53_v1  ;;  %v59_v7 = vmul.f32 %v56_v4, %v54_v2  ;;  %v81_v8 = vadd.f32 %v56_v4, %v54_v2 }
   0x5   :  { %v60_v9 = vrot.slane %v58_v5, 4  ;;  %v82_v10 = vrot.slane %v80_v6, 4  ;;  %v66_v11 = vrot.slane %v59_v7, 4  ;;  %v88_v12 = vrot.slane %v81_v8, 4 }
   0x7   :  { %v61_v13 = vadd.f32 %v60_v9, %v58_v5  ;;  %v83_v14 = vadd.f32 %v82_v10, %v80_v6  ;;  %v67_v15 = vadd.f32 %v66_v11, %v59_v7  ;;  %v89_v16 = vadd.f32 %v88_v12, %v81_v8 }
   0x8   :  { %v57_v31 = vld [vmem:[%s172_s2] sm:$0x3] }
   0x9   :  { %v62_v17 = vrot.slane %v61_v13, 2  ;;  %v84_v18 = vrot.slane %v83_v14, 2  ;;  %v68_v19 = vrot.slane %v67_v15, 2  ;;  %v90_v20 = vrot.slane %v89_v16, 2  ;;  %v79_v33 = vld [vmem:[%s173_s3] sm:$0x3] }
   0xb   :  { %v63_v21 = vadd.f32 %v62_v17, %v61_v13  ;;  %v85_v22 = vadd.f32 %v84_v18, %v83_v14  ;;  %v69_v23 = vadd.f32 %v68_v19, %v67_v15  ;;  %v91_v24 = vadd.f32 %v90_v20, %v89_v16 }
   0xd   :  { %v64_v25 = vrot.slane %v63_v21, 1  ;;  %v86_v26 = vrot.slane %v85_v22, 1  ;;  %v70_v27 = vrot.slane %v69_v23, 1  ;;  %v92_v28 = vrot.slane %v91_v24, 1 }
   0xf   :  { %v65_v29 = vadd.f32 %v64_v25, %v63_v21  ;;  %v87_v30 = vadd.f32 %v86_v26, %v85_v22  ;;  %v71_v32 = vadd.f32 %v70_v27, %v69_v23  ;;  %v93_v34 = vadd.f32 %v92_v28, %v91_v24 }
  0x11   :  { %v75_v35 = vsel %vm74_vm0, %v71_v32, %v65_v29  ;;  %v96_v36 = vsel %vm74_vm0, %v93_v34, %v87_v30 }
  0x12   :  { %v77_v37 = vadd.f32 %v75_v35, %v57_v31  ;;  %v98_v38 = vadd.f32 %v96_v36, %v79_v33 }
  0x14   :  { %78 = vst [vmem:[%s172_s2] sm:$0x3] %v77_v37  ;;  %99 = vst [vmem:[%s173_s3] sm:$0x3] %v98_v38 }

</bundles_post_ra>
